<compile_context>
chip_gen: v5e
topology: v5e:2x2
jax: 0.10.0
libtpu: 0.0.40
codegen_flags: <defaults>
</compile_context>

<pallas_src>
import functools
import math

import jax
import jax.numpy as jnp
from jax.experimental import pallas as pl
from jax.experimental.pallas import tpu as pltpu


def _layernorm_kernel(x_ref, scale_ref, shift_ref, o_ref, *, eps, d_true):
    # x_ref: (ROW_TILE, D_pad) tile in VMEM; scale/shift: (1, D_pad), resident
    # across the whole grid (constant block index => no re-DMA per step).
    x = x_ref[...].astype(jnp.float32)
    inv_d = 1.0 / float(d_true)
    # Single pass: sum(x) and sum(x*x).  Padding lanes (if any) are zero and
    # contribute nothing; divide by the true feature dim.
    s1 = jnp.sum(x, axis=-1, keepdims=True)
    s2 = jnp.sum(x * x, axis=-1, keepdims=True)
    mean = s1 * inv_d
    # Biased estimator (unbiased=False), matching torch.var(..., unbiased=False).
    var = jnp.maximum(s2 * inv_d - mean * mean, 0.0)
    inv_std = jax.lax.rsqrt(var + eps)
    scale = scale_ref[...].astype(jnp.float32)
    shift = shift_ref[...].astype(jnp.float32)
    o_ref[...] = ((x - mean) * inv_std * scale + shift).astype(o_ref.dtype)


def _tpu_budgets():
    """Generation-aware (vmem_limit_bytes, tile_budget_bytes, multi_core)."""
    mib = 1024 * 1024
    physical_vmem = 64 * mib  # conservative default (v7x has 64 MiB per TC)
    try:
        info = pltpu.get_tpu_info()
        physical_vmem = int(getattr(info, "vmem_capacity_bytes", physical_vmem))
    except Exception:
        pass
    try:
        kind = jax.devices()[0].device_kind.lower()
    except Exception:
        kind = ""
    if physical_vmem <= 0:
        physical_vmem = 64 * mib
    if physical_vmem >= 128 * mib:
        vmem_limit, tile_budget = 96 * mib, 64 * mib   # v5e / v6e (128 MiB)
    else:
        vmem_limit, tile_budget = 48 * mib, 32 * mib   # v7x (64 MiB)
    multi_core = "v7" in kind  # only v7x has 2 TensorCores per chip
    return vmem_limit, tile_budget, multi_core


def _pick_row_tile(rows, d, itemsize, tile_budget_bytes, multi_core):
    """Largest sublane-aligned row tile within the VMEM budget and block-byte cap."""
    rows_rounded = max(8, ((rows + 7) // 8) * 8)

    # VMEM working set per row: double-buffered in + out blocks at input dtype
    # (4*itemsize) plus f32 temporaries (x_f32 + f32 result before downcast,
    # ~12 B/elem including margin for sub-32-bit inputs).
    per_row_bytes = d * (4 * itemsize + 12)
    budget_tile = tile_budget_bytes // max(per_row_bytes, 1)

    # Cap by HBM block size (~4 MiB): beyond this, per-step grid overhead is
    # already well under 1% of the block's DMA time.
    target_block_bytes = 4 * 1024 * 1024
    block_tile = target_block_bytes // max(d * itemsize, 1)

    tile = min(budget_tile, block_tile)
    tile = max(8, (tile // 8) * 8)
    tile = min(tile, rows_rounded)

    if multi_core:
        # Keep >= ~4 grid steps so the parallel row axis can split across the
        # two TensorCores on v7x.
        cap = max(8, ((rows_rounded // 4) // 8) * 8)
        tile = min(tile, cap)
        steps = -(-rows // tile)
        if steps > 1 and steps % 2 == 1:
            # Best-effort: even step count avoids a one-block straggler.
            new_tile = max(8, ((-(-rows // (steps + 1)) + 7) // 8) * 8)
            if new_tile < tile:
                tile = new_tile
    return tile


def layernorm_pallas(x, scale, shift, *, eps=1e-5, row_tile=None):
    """LayerNorm over the last axis of x (any leading shape)."""
    orig_shape = x.shape
    d = orig_shape[-1]
    rows = int(math.prod(orig_shape[:-1])) if len(orig_shape) > 1 else 1

    x2 = x.reshape(rows, d)
    scale2 = scale.reshape(1, d)
    shift2 = shift.reshape(1, d)

    # Guarantee a lane-dense (multiple-of-128) feature dim: padded lanes are
    # zero (do not affect sums) and are sliced off after the kernel.
    d_pad = -(-d // 128) * 128
    if d_pad != d:
        x2 = jnp.pad(x2, ((0, 0), (0, d_pad - d)))
        scale2 = jnp.pad(scale2, ((0, 0), (0, d_pad - d)))
        shift2 = jnp.pad(shift2, ((0, 0), (0, d_pad - d)))

    vmem_limit, tile_budget, multi_core = _tpu_budgets()
    if row_tile is None:
        row_tile = _pick_row_tile(rows, d_pad, x2.dtype.itemsize,
                                  tile_budget, multi_core)

    grid = (pl.cdiv(rows, row_tile),)  # ragged last block handled by Pallas

    # TODO(synk): on v7x, sweep dimension_semantics=(pltpu.CORE_PARALLEL,) vs
    # ("parallel",) to confirm the row axis actually shards across both TCs.
    out = pl.pallas_call(
        functools.partial(_layernorm_kernel, eps=eps, d_true=d),
        out_shape=jax.ShapeDtypeStruct((rows, d_pad), x.dtype),
        grid_spec=pltpu.PrefetchScalarGridSpec(
            num_scalar_prefetch=0,
            grid=grid,
            in_specs=[
                pl.BlockSpec((row_tile, d_pad), lambda i: (i, 0)),
                pl.BlockSpec((1, d_pad), lambda i: (0, 0)),
                pl.BlockSpec((1, d_pad), lambda i: (0, 0)),
            ],
            out_specs=pl.BlockSpec((row_tile, d_pad), lambda i: (i, 0)),
        ),
        compiler_params=pltpu.CompilerParams(
            dimension_semantics=("parallel",),
            vmem_limit_bytes=vmem_limit,
        ),
    )(x2, scale2, shift2)

    if d_pad != d:
        out = out[:, :d]
    return out.reshape(orig_shape)


def layernorm_ref(x, scale, shift, eps=1e-5):
    x32 = x.astype(jnp.float32)
    mean = jnp.mean(x32, axis=-1, keepdims=True)
    var = jnp.mean((x32 - mean) ** 2, axis=-1, keepdims=True)
    norm = (x32 - mean) / jnp.sqrt(var + eps)
    return (scale * norm + shift).astype(x.dtype)


if __name__ == "__main__":
    key = jax.random.PRNGKey(0)
    # Small shapes; emb_dim=128 keeps the output lane-dense (multiple of 128).
    batch, seq, emb_dim = 2, 8, 128

    x = jax.random.normal(key, (batch, seq, emb_dim), dtype=jnp.float32)
    # Deterministic parameter init matching nn.Parameter(torch.ones/zeros(emb_dim)).
    scale = jnp.ones((emb_dim,), dtype=jnp.float32)
    shift = jnp.zeros((emb_dim,), dtype=jnp.float32)

    out = layernorm_pallas(x, scale, shift)
    out = jax.block_until_ready(out)

    ref = layernorm_ref(x, scale, shift)
    assert out.shape == x.shape
    assert jnp.allclose(out, ref, atol=1e-5, rtol=1e-5), "mismatch vs reference"

    print("KERNEL_OK")
</pallas_src>

<mosaic_0001>
module attributes {stable_mosaic.version = 11 : i64} {
  func.func @_layernorm_kernel(%arg0: i32, %arg1: memref<16x128xf32, #tpu.memory_space<vmem>>, %arg2: memref<1x128xf32, #tpu.memory_space<vmem>>, %arg3: memref<1x128xf32, #tpu.memory_space<vmem>>, %arg4: memref<16x128xf32, #tpu.memory_space<vmem>>) attributes {dimension_semantics = [#tpu.dimension_semantics<parallel>], iteration_bounds = array<i64: 1>, scalar_prefetch = 0 : i64, scratch_operands = 0 : i64, tpu.core_type = #tpu.core_type<tc>, window_params = [{transform_indices = @transform_0, window_bounds = array<i64: 16, 128>}, {pipeline_mode = #tpu.pipeline_mode<synchronous>, transform_indices = @transform_1, window_bounds = array<i64: 1, 128>}, {pipeline_mode = #tpu.pipeline_mode<synchronous>, transform_indices = @transform_2, window_bounds = array<i64: 1, 128>}, {transform_indices = @transform_3, window_bounds = array<i64: 16, 128>}]} {
    %c0 = arith.constant 0 : index
    %c0_0 = arith.constant 0 : index
    %0 = vector.load %arg1[%c0, %c0_0] : memref<16x128xf32, #tpu.memory_space<vmem>>, vector<16x128xf32>
    %cst = arith.constant dense<0.000000e+00> : vector<16xf32>
    %1 = vector.multi_reduction <add>, %0, %cst [1] : vector<16x128xf32> to vector<16xf32>
    %2 = vector.shape_cast %1 : vector<16xf32> to vector<16x1xf32>
    %3 = arith.mulf %0, %0 : vector<16x128xf32>
    %cst_1 = arith.constant dense<0.000000e+00> : vector<16xf32>
    %4 = vector.multi_reduction <add>, %3, %cst_1 [1] : vector<16x128xf32> to vector<16xf32>
    %5 = vector.shape_cast %4 : vector<16xf32> to vector<16x1xf32>
    %cst_2 = arith.constant 7.812500e-03 : f32
    %6 = vector.broadcast %cst_2 : f32 to vector<16x1xf32>
    %7 = arith.mulf %2, %6 : vector<16x1xf32>
    %cst_3 = arith.constant 7.812500e-03 : f32
    %8 = vector.broadcast %cst_3 : f32 to vector<16x1xf32>
    %9 = arith.mulf %5, %8 : vector<16x1xf32>
    %10 = arith.mulf %7, %7 : vector<16x1xf32>
    %11 = arith.subf %9, %10 : vector<16x1xf32>
    %cst_4 = arith.constant 0.000000e+00 : f32
    %12 = vector.broadcast %cst_4 : f32 to vector<16x1xf32>
    %13 = arith.maximumf %11, %12 : vector<16x1xf32>
    %cst_5 = arith.constant 9.99999974E-6 : f32
    %14 = vector.broadcast %cst_5 : f32 to vector<16x1xf32>
    %15 = arith.addf %13, %14 : vector<16x1xf32>
    %16 = math.rsqrt %15 : vector<16x1xf32>
    %c0_6 = arith.constant 0 : index
    %c0_7 = arith.constant 0 : index
    %17 = vector.load %arg2[%c0_6, %c0_7] : memref<1x128xf32, #tpu.memory_space<vmem>>, vector<1x128xf32>
    %c0_8 = arith.constant 0 : index
    %c0_9 = arith.constant 0 : index
    %18 = vector.load %arg3[%c0_8, %c0_9] : memref<1x128xf32, #tpu.memory_space<vmem>>, vector<1x128xf32>
    %19 = vector.broadcast %7 : vector<16x1xf32> to vector<16x128xf32>
    %20 = arith.subf %0, %19 : vector<16x128xf32>
    %21 = vector.broadcast %16 : vector<16x1xf32> to vector<16x128xf32>
    %22 = arith.mulf %20, %21 : vector<16x128xf32>
    %23 = vector.broadcast %17 : vector<1x128xf32> to vector<16x128xf32>
    %24 = arith.mulf %22, %23 : vector<16x128xf32>
    %25 = vector.broadcast %18 : vector<1x128xf32> to vector<16x128xf32>
    %26 = arith.addf %24, %25 : vector<16x128xf32>
    %c0_10 = arith.constant 0 : index
    %c0_11 = arith.constant 0 : index
    %27 = vector.load %arg4[%c0_10, %c0_11] : memref<16x128xf32, #tpu.memory_space<vmem>>, vector<16x128xf32>
    tpu.vector_store %arg4[%c0_10, %c0_11], %26 {strides = array<i32>} : memref<16x128xf32, #tpu.memory_space<vmem>>, vector<16x128xf32>,
    return
  }
  func.func @transform_0(%arg0: i32) -> (i32, i32) {
    %c0_i32 = arith.constant 0 : i32
    %c0_i32_0 = arith.constant 0 : i32
    return %arg0, %c0_i32 : i32, i32
  }
  func.func @transform_1(%arg0: i32) -> (i32, i32) {
    %c0_i32 = arith.constant 0 : i32
    %c0_i32_0 = arith.constant 0 : i32
    %c0_i32_1 = arith.constant 0 : i32
    return %c0_i32, %c0_i32_0 : i32, i32
  }
  func.func @transform_2(%arg0: i32) -> (i32, i32) {
    %c0_i32 = arith.constant 0 : i32
    %c0_i32_0 = arith.constant 0 : i32
    %c0_i32_1 = arith.constant 0 : i32
    return %c0_i32, %c0_i32_0 : i32, i32
  }
  func.func @transform_3(%arg0: i32) -> (i32, i32) {
    %c0_i32 = arith.constant 0 : i32
    %c0_i32_0 = arith.constant 0 : i32
    return %arg0, %c0_i32 : i32, i32
  }
}

</mosaic_0001>

<bundles_post_ra>
// kernel: tpu_custom_call.1
= control target key start
LH: loop header
LB: loop body
LE: loop exit
PB: predicated region body
PF: predicated region fallthrough
CT: control target
= control target key end

     0   :  { %8 = vsyncpa [#allocation3], 0  ;;  %s259_s0 = inlined_call_operand.hbm [shape: f32[16,128], index: 0, kind: input, shape index: {}]   ;;  %s260_s1 = inlined_call_operand.hbm [shape: f32[1,128], index: 1, kind: input, shape index: {}]   ;;  %s261_s2 = inlined_call_operand.vmem [shape: f32[1,128], index: 2, kind: input, shape index: {}]   ;;  %s262_s3 = inlined_call_operand.hbm [shape: f32[16,128], index: 3, kind: output, shape index: {}]  }
   0x1   :  { %9 = vsyncpa [#allocation6], 0 }
   0x2   :  { %10 = vsyncpa [#allocation4], 0  ;;  %s15_s14 = sshll.u32 %s259_s0, 4  ;;  %s216_s15 = smov [#allocation2]   ;;  %s16_s14 = int_to_ptr.hbm [resolvable:$true] %s15_s14 }
   0x3   :  { %s17_s16 = sshll.u32 %s216_s15, 4  ;;  %s29_s19 = sshll.u32 %s260_s1, 4  ;;  %s18_s16 = int_to_ptr.vmem [resolvable:$true] %s17_s16  ;;  %s30_s19 = int_to_ptr.hbm [resolvable:$true] %s29_s19 }
   0x4   :  { %s217_s20 = smov 128   ;;  %s218_s21 = smov 8  }
   0x5   :  { %23 = dma.hbm_to_vmem [thread:$0]  %s16_s14, 256, %s18_s16, [#allocation3], %s217_s20, %s217_s20, %s218_s21  }
   0x6   :  { %s219_s22 = smov [#allocation5]  }
   0x7   :  { %s31_s23 = sshll.u32 %s219_s22, 4  ;;  %s32_s23 = int_to_ptr.vmem [resolvable:$true] %s31_s23 }
   0x8   :  { %34 = dma.hbm_to_vmem [thread:$0]  %s30_s19, 16, %s32_s23, [#allocation6]  }
   0x9   :  { %210 = dma.done.wait [#allocation3], 256  }
   0xa   :  { %211 = vsyncadd [#allocation3], 4294967040 }
   0xb   :  { %212 = dma.done.wait [#allocation6], 16  }
   0xc   :  { %213 = vsyncadd [#allocation6], 4294967280  ;;  %v45_v0 = vld [vmem:[#allocation2] sm:$0xff]  ;;  %v46_v2 = vld [vmem:[#allocation2 + $0x8] sm:$0xff]  ;;  %s220_s24 = smov [#allocation7]   ;;  %s113_s28 = sshll.u32 %s262_s3, 4  ;;  %s114_s28 = int_to_ptr.hbm [resolvable:$true] %s113_s28 }
   0xd   :  { %47 = vadd.xlane.f32.xlu0 %v45_v0  ;;  %v51_v1 = vmul.f32 %v45_v0, %v45_v0  ;;  %v52_v3 = vmul.f32 %v46_v2, %v46_v2  ;;  %v132_v29 = vld [vmem:[#allocation5] ss:$0 sm:$0xff]  ;;  %v133_v33 = vld [vmem:[%s261_s2] ss:$0 sm:$0xff]  ;;  %s111_s25 = sshll.u32 %s220_s24, 4  ;;  %s112_s25 = int_to_ptr.vmem [resolvable:$true] %s111_s25 }
   0xf   :  { %53 = vadd.xlane.f32.xlu1 %v51_v1 }
  0x15   :  { %49 = vadd.xlane.f32.xlu0 %v46_v2 }
  0x17   :  { %55 = vadd.xlane.f32.xlu1 %v52_v3 }
  0x80   :  { %v48_v4 = vpop.xlane.xlu0 %47 }
  0x81   :  { %v57_v5 = vmul.f32 0.0078125, %v48_v4 }
  0x82   :  { %v54_v6 = vpop.xlane.xlu1 %53 }
  0x83   :  { %v61_v7 = vmul.f32 %v57_v5, %v57_v5  ;;  %v59_v8 = vmul.f32 0.0078125, %v54_v6  ;;  %v91_v27 = vsub.f32 %v45_v0, %v57_v5 }
  0x85   :  { %v63_v9 = vsub.f32 %v59_v8, %v61_v7 }
  0x87   :  { %v65_v10 = vmax.f32 %v63_v9, 0.0 }
  0x88   :  { %v50_v11 = vpop.xlane.xlu0 %49 }
  0x89   :  { %v67_v12 = vadd.f32 1e-05, %v65_v10  ;;  %v58_v13 = vmul.f32 0.0078125, %v50_v11 }
  0x8a   :  { %v56_v14 = vpop.xlane.xlu1 %55 }
  0x8b   :  { %134 = vrsqrt.f32 %v67_v12  ;;  %v62_v15 = vmul.f32 %v58_v13, %v58_v13  ;;  %v60_v16 = vmul.f32 0.0078125, %v56_v14  ;;  %vm75_vm1 = vweird.f32 %v67_v12 }
  0x8c   :  { %v92_v39 = vsub.f32 %v46_v2, %v58_v13 }
  0x8d   :  { %v64_v17 = vsub.f32 %v60_v16, %v62_v15 }
  0x8f   :  { %v66_v18 = vmax.f32 %v64_v17, 0.0 }
  0x91   :  { %v135_v19 = vpop.eup %134  ;;  %v68_v21 = vadd.f32 1e-05, %v66_v18 }
  0x92   :  { %v70_v20 = vmul.f32 %v135_v19, %v67_v12  ;;  %vm76_vm0 = vweird.f32 %v135_v19 }
  0x93   :  { %136 = vrsqrt.f32 %v68_v21  ;;  %vm77_vm2 = vmor %vm75_vm1, %vm76_vm0  ;;  %vm85_vm4 = vweird.f32 %v68_v21 }
  0x94   :  { %v71_v22 = vmul.f32 %v135_v19, %v70_v20 }
  0x96   :  { %v72_v23 = vmul.f32 0.5, %v71_v22 }
  0x98   :  { %v73_v24 = vsub.f32 1.5, %v72_v23 }
  0x99   :  { %v137_v25 = vpop.eup %136 }
  0x9a   :  { %v74_v26 = vmul.f32 %v135_v19, %v73_v24  ;;  %v80_v28 = vmul.f32 %v137_v25, %v68_v21  ;;  %vm86_vm3 = vweird.f32 %v137_v25 }
  0x9b   :  { %vm87_vm5 = vmor %vm85_vm4, %vm86_vm3 }
  0x9c   :  { %v78_v30 = vsel %vm77_vm2, %v135_v19, %v74_v26  ;;  %v81_v31 = vmul.f32 %v137_v25, %v80_v28 }
  0x9d   :  { %v93_v32 = vmul.f32 %v91_v27, %v78_v30 }
  0x9e   :  { %v82_v34 = vmul.f32 0.5, %v81_v31 }
  0x9f   :  { %v98_v35 = vmul.f32 %v132_v29, %v93_v32 }
  0xa0   :  { %v83_v36 = vsub.f32 1.5, %v82_v34 }
  0xa1   :  { %v103_v37 = vadd.f32 %v133_v33, %v98_v35 }
  0xa2   :  { %v84_v38 = vmul.f32 %v137_v25, %v83_v36 }
  0xa3   :  { %105 = vst [vmem:[#allocation7] sm:$0xff] %v103_v37 }
  0xa4   :  { %v88_v40 = vsel %vm87_vm5, %v137_v25, %v84_v38 }
  0xa5   :  { %v94_v41 = vmul.f32 %v92_v39, %v88_v40 }
  0xa7   :  { %v99_v42 = vmul.f32 %v132_v29, %v94_v41 }
  0xa9   :  { %v104_v43 = vadd.f32 %v133_v33, %v99_v42 }
  0xab   :  { %106 = vst [vmem:[#allocation7 + $0x8] sm:$0xff] %v104_v43 }
  0xac   :  { %119 = dma.vmem_to_hbm [thread:$0]  %s112_s25, 256, %s114_s28, [#allocation4], %s217_s20, %s217_s20, %s218_s21  }
  0xad   :  { %214 = dma.done.wait [#allocation4], 256  }
  0xae   :  { %215 = vsyncadd [#allocation4], 4294967040 }
  0xaf   :  { %124 = vsyncpa [#allocation3], 1 }
  0xb0   :  { %125 = vsyncpa [#allocation6], 1 }
  0xb1   :  { %126 = vsyncpa [#allocation4], 1 }

</bundles_post_ra>
